<compile_context>
chip_gen: v7x
topology: tpu7x:2x2x1
jax: 0.10.0
libtpu: 0.0.40
codegen_flags: <defaults>
</compile_context>

<pallas_src>
import math
from functools import lru_cache

import jax
import jax.numpy as jnp
from jax.experimental import pallas as pl
from jax.experimental.pallas import tpu as pltpu

LANE = 128
M_ALIGN = 16  # bf16 packs 16 rows per vreg sublane group; also fine for f32.


def _round_up(x, m):
    return (x + m - 1) // m * m


@lru_cache(maxsize=1)
def _gen_defaults():
    """Per-TPU-generation tiling / VMEM defaults."""
    kind = ""
    try:
        kind = jax.devices()[0].device_kind.lower()
    except Exception:
        pass
    if "v7" in kind:
        # 64 MiB VMEM per TC, 2 TensorCores: tighter budget, force >=2 M steps.
        return dict(tm=512, vmem_budget=24 << 20, vmem_limit=40 << 20,
                    n_align=256, two_steps=True)
    if "v6" in kind:
        return dict(tm=1024, vmem_budget=64 << 20, vmem_limit=96 << 20,
                    n_align=256, two_steps=False)
    # v5e (and anything unknown): 128-wide MXU, 128 MiB physical VMEM.
    return dict(tm=1024, vmem_budget=64 << 20, vmem_limit=96 << 20,
                n_align=128, two_steps=False)


def _linear_kernel(x_ref, w_ref, b_ref, o_ref):
    # x_ref: (TM, K) input dtype; w_ref: (K, Np) compute dtype;
    # b_ref: (1, Np) f32;        o_ref: (TM, Np) f32.
    x = x_ref[...].astype(w_ref.dtype)          # in-register cast, no HBM pass
    acc = jnp.dot(x, w_ref[...], preferred_element_type=jnp.float32)
    o_ref[...] = (acc + b_ref[...]).astype(o_ref.dtype)


# Whether we may single-buffer the grid-invariant weight/bias blocks.
_SINGLE_BUFFER_WEIGHTS = [hasattr(pl, "Buffered")]


def _vmem_bytes(tm, K, Np, x_bytes, w_bytes, single_buf_w):
    w_copies = 1 if single_buf_w else 2
    return (2 * tm * K * x_bytes            # double-buffered x blocks
            + 2 * tm * Np * 4               # double-buffered f32 output blocks
            + w_copies * (K * Np * w_bytes + Np * 4))  # resident weight + bias


def pallas_linear(x2d, w_t, b_row, *, tm=None):
    """y = x2d @ w_t + b_row  (f32 accumulate, f32 out).

    x2d:   [M, K]  any float dtype (cast to w_t.dtype inside the kernel)
    w_t:   [K, Np] pre-transposed, lane-padded weight, already in compute dtype
    b_row: [1, Np] float32
    returns [M, Np] float32
    """
    M, K = x2d.shape
    Kw, Np = w_t.shape
    assert K == Kw and b_row.shape == (1, Np) and Np % LANE == 0

    cfg = _gen_defaults()
    tm_req = tm if tm is not None else cfg["tm"]

    # M tile: multiple of 16, no larger than needed.
    tm_eff = min(_round_up(tm_req, M_ALIGN), _round_up(M, M_ALIGN))
    if cfg["two_steps"] and M > M_ALIGN:
        # v7x: keep >=2 grid steps so the "parallel" M axis spans both TCs.
        tm_eff = min(tm_eff, _round_up(pl.cdiv(M, 2), M_ALIGN))
    # Shrink until the block working set fits the per-generation VMEM budget.
    x_b = x2d.dtype.itemsize
    w_b = w_t.dtype.itemsize
    while (tm_eff > M_ALIGN and
           _vmem_bytes(tm_eff, K, Np, x_b, w_b, _SINGLE_BUFFER_WEIGHTS[0])
           > cfg["vmem_budget"]):
        tm_eff = max(M_ALIGN, _round_up(tm_eff // 2, M_ALIGN))

    grid = (pl.cdiv(M, tm_eff),)  # ragged last block: stores clipped to bounds

    cost = pl.CostEstimate(
        flops=2 * M * K * Np,
        transcendentals=0,
        bytes_accessed=M * K * x_b + K * Np * w_b + Np * 4 + M * Np * 4,
    )

    def call(single_buffer_weights):
        res_kw = ({"pipeline_mode": pl.Buffered(1)}
                  if single_buffer_weights else {})
        return pl.pallas_call(
            _linear_kernel,
            out_shape=jax.ShapeDtypeStruct((M, Np), jnp.float32),
            grid=grid,
            in_specs=[
                # x: streamed / double-buffered along M.
                pl.BlockSpec((tm_eff, K), lambda i: (i, 0)),
                # weight / bias: grid-invariant, VMEM-resident.
                pl.BlockSpec((K, Np), lambda i: (0, 0), **res_kw),
                pl.BlockSpec((1, Np), lambda i: (0, 0), **res_kw),
            ],
            out_specs=pl.BlockSpec((tm_eff, Np), lambda i: (i, 0)),
            compiler_params=pltpu.CompilerParams(
                dimension_semantics=("parallel",),   # megacore-shard M on v7x
                vmem_limit_bytes=cfg["vmem_limit"],
            ),
            cost_estimate=cost,
        )(x2d, w_t, b_row)

    if _SINGLE_BUFFER_WEIGHTS[0]:
        try:
            return call(True)
        except Exception:
            # pipeline_mode / Buffered(1) not supported here: fall back cleanly.
            _SINGLE_BUFFER_WEIGHTS[0] = False
    return call(False)


class GetFeature:
    """JAX/Pallas port of the PyTorch GetFeature module.

    compute_dtype=bf16 (default) runs the MXU at its native bf16 rate with f32
    accumulation; pass jnp.float32 to reproduce PyTorch f32 numerics exactly.
    """

    def __init__(self, tgt_num_nodes, src_num_nodes, key,
                 compute_dtype=jnp.bfloat16):
        self.compute_dtype = compute_dtype
        k1, k2, k3, k4 = jax.random.split(key, 4)

        # PyTorch nn.Linear default init: U(-1/sqrt(in), 1/sqrt(in)).
        bound1 = 1.0 / math.sqrt(tgt_num_nodes)
        self.w1 = jax.random.uniform(k1, (src_num_nodes, tgt_num_nodes),
                                     jnp.float32, -bound1, bound1)
        self.b1 = jax.random.uniform(k2, (src_num_nodes,),
                                     jnp.float32, -bound1, bound1)
        bound2 = 1.0 / math.sqrt(src_num_nodes)
        self.w2 = jax.random.uniform(k3, (tgt_num_nodes, src_num_nodes),
                                     jnp.float32, -bound2, bound2)
        self.b2 = jax.random.uniform(k4, (tgt_num_nodes,),
                                     jnp.float32, -bound2, bound2)

        # One-time kernel-friendly layouts: W^T zero-padded to a lane-dense N
        # (256 on v6e/v7x for the 2x256 MXU, 128 on v5e), already cast to the
        # compute dtype (no per-call .astype HBM pass). Bias stays f32: it is
        # added after the f32 accumulation and its footprint is negligible.
        n_align = _gen_defaults()["n_align"]

        def pack(w, b, n_out, k_in):
            n_pad = _round_up(n_out, n_align)
            w_t = (jnp.zeros((k_in, n_pad), jnp.float32)
                   .at[:, :n_out].set(w.T)).astype(compute_dtype)
            b_row = (jnp.zeros((1, n_pad), jnp.float32)
                     .at[:, :n_out].set(b))
            return w_t, b_row

        # NOTE: the contraction dim K stays un-padded / VMEM-resident; only pad
        # K and add a K grid axis + accumulator once num_nodes is in the
        # hundreds+ (sooner on v7x's 64 MiB VMEM).
        self.n1 = src_num_nodes
        self.w1_t, self.b1_row = pack(self.w1, self.b1,
                                      src_num_nodes, tgt_num_nodes)
        self.n2 = tgt_num_nodes
        self.w2_t, self.b2_row = pack(self.w2, self.b2,
                                      tgt_num_nodes, src_num_nodes)

    def __call__(self, data, typo):
        """data: [batch, seq_len, nodes_in] -> [batch, seq_len, nodes_out]."""
        B, S, K = data.shape
        x2d = data.reshape(B * S, K)
        if typo == "tgt2src":
            w_t, b_row, n_out = self.w1_t, self.b1_row, self.n1
        elif typo == "src2tgt":
            w_t, b_row, n_out = self.w2_t, self.b2_row, self.n2
        else:
            raise ValueError(f"unknown typo: {typo}")
        out2d = pallas_linear(x2d, w_t, b_row)
        return out2d[:, :n_out].reshape(B, S, n_out)


if __name__ == "__main__":
    key = jax.random.PRNGKey(0)
    k_params, k_tgt, k_src = jax.random.split(key, 3)

    tgt_num_nodes = 16
    src_num_nodes = 32
    batch, seq_len = 2, 8

    # Same key -> identical weights; only the MXU compute dtype differs.
    model_bf16 = GetFeature(tgt_num_nodes, src_num_nodes, k_params)  # default bf16
    model_f32 = GetFeature(tgt_num_nodes, src_num_nodes, k_params,
                           compute_dtype=jnp.float32)

    data_tgt = jax.random.normal(k_tgt, (batch, seq_len, tgt_num_nodes), jnp.float32)
    data_src = jax.random.normal(k_src, (batch, seq_len, src_num_nodes), jnp.float32)

    out1 = model_bf16(data_tgt, "tgt2src")     # [2, 8, 32]
    out2 = model_bf16(data_src, "src2tgt")     # [2, 8, 16]
    out1_f32 = model_f32(data_tgt, "tgt2src")
    out2_f32 = model_f32(data_src, "src2tgt")
    jax.block_until_ready((out1, out2, out1_f32, out2_f32))

    # Pure-JAX reference (f32 semantics of the PyTorch module).
    ref1 = data_tgt @ model_f32.w1.T + model_f32.b1
    ref2 = data_src @ model_f32.w2.T + model_f32.b2

    assert out1.shape == (batch, seq_len, src_num_nodes)
    assert out2.shape == (batch, seq_len, tgt_num_nodes)
    # f32 path: tight tolerance (exact PyTorch semantics).
    assert jnp.allclose(out1_f32, ref1, atol=1e-5)
    assert jnp.allclose(out2_f32, ref2, atol=1e-5)
    # bf16 MXU path (default): looser tolerance (f32 accumulation, bf16 inputs).
    assert jnp.allclose(out1, ref1, atol=5e-2, rtol=5e-2)
    assert jnp.allclose(out2, ref2, atol=5e-2, rtol=5e-2)

    print("KERNEL_OK")
</pallas_src>

<mosaic_0001>
module attributes {stable_mosaic.version = 11 : i64} {
  func.func @_linear_kernel(%arg0: i32, %arg1: memref<16x16xf32, #tpu.memory_space<vmem>>, %arg2: memref<16x128xbf16, #tpu.memory_space<vmem>>, %arg3: memref<1x128xf32, #tpu.memory_space<vmem>>, %arg4: memref<16x128xf32, #tpu.memory_space<vmem>>) attributes {dimension_semantics = [#tpu.dimension_semantics<parallel>], iteration_bounds = array<i64: 1>, scalar_prefetch = 0 : i64, scratch_operands = 0 : i64, tpu.core_type = #tpu.core_type<tc>, window_params = [{transform_indices = @transform_0, window_bounds = array<i64: 16, 16>}, {pipeline_mode = #tpu.pipeline_mode<synchronous>, transform_indices = @transform_1, window_bounds = array<i64: 16, 128>}, {pipeline_mode = #tpu.pipeline_mode<synchronous>, transform_indices = @transform_2, window_bounds = array<i64: 1, 128>}, {transform_indices = @transform_3, window_bounds = array<i64: 16, 128>}]} {
    %c0 = arith.constant 0 : index
    %c0_0 = arith.constant 0 : index
    %0 = vector.load %arg1[%c0, %c0_0] : memref<16x16xf32, #tpu.memory_space<vmem>>, vector<16x16xf32>
    %1 = arith.truncf %0 : vector<16x16xf32> to vector<16x16xbf16>
    %c0_1 = arith.constant 0 : index
    %c0_2 = arith.constant 0 : index
    %2 = vector.load %arg2[%c0_1, %c0_2] : memref<16x128xbf16, #tpu.memory_space<vmem>>, vector<16x128xbf16>
    %cst = arith.constant dense<0.000000e+00> : vector<16x128xf32>
    %3 = tpu.matmul %1, %2, %cst {dimension_numbers = #tpu.dot_dimension_numbers<[1], [0], [0], [1], [0, 0, 1, 1], [], []>} : vector<16x16xbf16>, vector<16x128xbf16>, vector<16x128xf32> -> vector<16x128xf32>
    %c0_3 = arith.constant 0 : index
    %c0_4 = arith.constant 0 : index
    %4 = vector.load %arg3[%c0_3, %c0_4] : memref<1x128xf32, #tpu.memory_space<vmem>>, vector<1x128xf32>
    %5 = vector.broadcast %4 : vector<1x128xf32> to vector<16x128xf32>
    %6 = arith.addf %3, %5 : vector<16x128xf32>
    %c0_5 = arith.constant 0 : index
    %c0_6 = arith.constant 0 : index
    %7 = vector.load %arg4[%c0_5, %c0_6] : memref<16x128xf32, #tpu.memory_space<vmem>>, vector<16x128xf32>
    tpu.vector_store %arg4[%c0_5, %c0_6], %6 {strides = array<i32>} : memref<16x128xf32, #tpu.memory_space<vmem>>, vector<16x128xf32>,
    return
  }
  func.func @transform_0(%arg0: i32) -> (i32, i32) {
    %c0_i32 = arith.constant 0 : i32
    %c0_i32_0 = arith.constant 0 : i32
    return %arg0, %c0_i32 : i32, i32
  }
  func.func @transform_1(%arg0: i32) -> (i32, i32) {
    %c0_i32 = arith.constant 0 : i32
    %c0_i32_0 = arith.constant 0 : i32
    %c0_i32_1 = arith.constant 0 : i32
    return %c0_i32, %c0_i32_0 : i32, i32
  }
  func.func @transform_2(%arg0: i32) -> (i32, i32) {
    %c0_i32 = arith.constant 0 : i32
    %c0_i32_0 = arith.constant 0 : i32
    %c0_i32_1 = arith.constant 0 : i32
    return %c0_i32, %c0_i32_0 : i32, i32
  }
  func.func @transform_3(%arg0: i32) -> (i32, i32) {
    %c0_i32 = arith.constant 0 : i32
    %c0_i32_0 = arith.constant 0 : i32
    return %arg0, %c0_i32 : i32, i32
  }
}

module attributes {stable_mosaic.version = 11 : i64} {
  func.func @_linear_kernel(%arg0: i32, %arg1: memref<16x16xf32, #tpu.memory_space<vmem>>, %arg2: memref<16x128xbf16, #tpu.memory_space<vmem>>, %arg3: memref<1x128xf32, #tpu.memory_space<vmem>>, %arg4: memref<16x128xf32, #tpu.memory_space<vmem>>) attributes {dimension_semantics = [#tpu.dimension_semantics<parallel>], iteration_bounds = array<i64: 1>, scalar_prefetch = 0 : i64, scratch_operands = 0 : i64, tpu.core_type = #tpu.core_type<tc>, window_params = [{transform_indices = @transform_0, window_bounds = array<i64: 16, 16>}, {pipeline_mode = #tpu.pipeline_mode<synchronous>, transform_indices = @transform_1, window_bounds = array<i64: 16, 128>}, {pipeline_mode = #tpu.pipeline_mode<synchronous>, transform_indices = @transform_2, window_bounds = array<i64: 1, 128>}, {transform_indices = @transform_3, window_bounds = array<i64: 16, 128>}]} {
    %c0 = arith.constant 0 : index
    %c0_0 = arith.constant 0 : index
    %0 = vector.load %arg1[%c0, %c0_0] : memref<16x16xf32, #tpu.memory_space<vmem>>, vector<16x16xf32>
    %1 = arith.truncf %0 : vector<16x16xf32> to vector<16x16xbf16>
    %c0_1 = arith.constant 0 : index
    %c0_2 = arith.constant 0 : index
    %2 = vector.load %arg2[%c0_1, %c0_2] : memref<16x128xbf16, #tpu.memory_space<vmem>>, vector<16x128xbf16>
    %cst = arith.constant dense<0.000000e+00> : vector<16x128xf32>
    %3 = tpu.matmul %1, %2, %cst {dimension_numbers = #tpu.dot_dimension_numbers<[1], [0], [0], [1], [0, 0, 1, 1], [], []>} : vector<16x16xbf16>, vector<16x128xbf16>, vector<16x128xf32> -> vector<16x128xf32>
    %c0_3 = arith.constant 0 : index
    %c0_4 = arith.constant 0 : index
    %4 = vector.load %arg3[%c0_3, %c0_4] : memref<1x128xf32, #tpu.memory_space<vmem>>, vector<1x128xf32>
    %5 = vector.broadcast %4 : vector<1x128xf32> to vector<16x128xf32>
    %6 = arith.addf %3, %5 : vector<16x128xf32>
    %c0_5 = arith.constant 0 : index
    %c0_6 = arith.constant 0 : index
    %7 = vector.load %arg4[%c0_5, %c0_6] : memref<16x128xf32, #tpu.memory_space<vmem>>, vector<16x128xf32>
    tpu.vector_store %arg4[%c0_5, %c0_6], %6 {strides = array<i32>} : memref<16x128xf32, #tpu.memory_space<vmem>>, vector<16x128xf32>,
    return
  }
  func.func @transform_0(%arg0: i32) -> (i32, i32) {
    %c0_i32 = arith.constant 0 : i32
    %c0_i32_0 = arith.constant 0 : i32
    return %arg0, %c0_i32 : i32, i32
  }
  func.func @transform_1(%arg0: i32) -> (i32, i32) {
    %c0_i32 = arith.constant 0 : i32
    %c0_i32_0 = arith.constant 0 : i32
    %c0_i32_1 = arith.constant 0 : i32
    return %c0_i32, %c0_i32_0 : i32, i32
  }
  func.func @transform_2(%arg0: i32) -> (i32, i32) {
    %c0_i32 = arith.constant 0 : i32
    %c0_i32_0 = arith.constant 0 : i32
    %c0_i32_1 = arith.constant 0 : i32
    return %c0_i32, %c0_i32_0 : i32, i32
  }
  func.func @transform_3(%arg0: i32) -> (i32, i32) {
    %c0_i32 = arith.constant 0 : i32
    %c0_i32_0 = arith.constant 0 : i32
    return %arg0, %c0_i32 : i32, i32
  }
}

</mosaic_0001>

<bundles_post_ra>
// kernel: tpu_custom_call.1
= control target key start
LH: loop header
LB: loop body
LE: loop exit
PB: predicated region body
PF: predicated region fallthrough
CT: control target
= control target key end

     0   :  { %8 = vsyncpa [#allocation3], 0  ;;  %s338_s0 = inlined_call_operand.hbm [shape: f32[16,16], index: 0, kind: input, shape index: {}]   ;;  %s339_s1 = inlined_call_operand.hbm [shape: bf16[16,128], index: 1, kind: input, shape index: {}]   ;;  %s340_s2 = inlined_call_operand.hbm [shape: f32[1,128], index: 2, kind: input, shape index: {}]   ;;  %s341_s3 = inlined_call_operand.hbm [shape: f32[16,128], index: 3, kind: output, shape index: {}]  }
   0x1   :  { %9 = vsyncpa [#allocation6], 0 }
   0x2   :  { %10 = vsyncpa [#allocation4], 0  ;;  %s254_s12 = smov [#allocation5]   ;;  %s160_s16 = scalar_lea.hbm %s339_s1, 128 }
   0x3   :  { %s28_s13 = sshll.u32 %s254_s12, 4  ;;  %p161_p0 = scmp.ne.s32.totalorder %s339_s1, %s160_s16  ;;  %s29_s13 = int_to_ptr.vmem [resolvable:$true] %s28_s13 }
   0x4   :  { %p164_p1 = scmp.lt.u32.totalorder %s160_s16, %s339_s1 }
   0x6   :  { %p166_p2 = pnand %p164_p1, %p161_p0 }
   0x8   :  { %169 = shalt.err (!%p166_p2)
}
   0x9   :  { %s170_s21 = scalar_lea.vmem %s29_s13, 128  ;;  %p175_p4 = scmp.lt.s32.totalorder %s29_s13, %s29_s13 }
   0xa   :  { %p171_p3 = scmp.ne.s32.totalorder %s29_s13, %s170_s21  ;;  %p176_p5 = scmp.lt.s32.totalorder %s170_s21, %s170_s21 }
   0xc   :  { %p177_p6 = por %p176_p5, %p175_p4 }
   0xe   :  { %p178_p7 = pnand %p177_p6, %p171_p3 }
  0x10   :  { %181 = shalt.err (!%p178_p7)
}
  0x11   :  { %s255_s22 = smov 64   ;;  %s256_s23 = smov 4  }
  0x12   :  { %34 = dma.hbm_to_vmem [thread:$0]  %s339_s1, 128, %s29_s13, [#allocation6], %s255_s22, %s255_s22, %s256_s23  }
  0x13   :  { %s257_s26 = smov [#allocation2]   ;;  %s182_s30 = scalar_lea.hbm %s338_s0, 256 }
  0x14   :  { %s16_s27 = sshll.u32 %s257_s26, 4  ;;  %p183_p8 = scmp.ne.s32.totalorder %s338_s0, %s182_s30  ;;  %s17_s27 = int_to_ptr.vmem [resolvable:$true] %s16_s27 }
  0x15   :  { %p186_p9 = scmp.lt.u32.totalorder %s182_s30, %s338_s0 }
  0x17   :  { %p188_p10 = pnand %p186_p9, %p183_p8 }
  0x19   :  { %191 = shalt.err (!%p188_p10)
}
  0x1a   :  { %s192_s8 = scalar_lea.vmem %s17_s27, 256  ;;  %p197_p12 = scmp.lt.s32.totalorder %s17_s27, %s17_s27 }
  0x1b   :  { %p193_p11 = scmp.ne.s32.totalorder %s17_s27, %s192_s8  ;;  %p198_p13 = scmp.lt.s32.totalorder %s192_s8, %s192_s8 }
  0x1d   :  { %p199_p0 = por %p198_p13, %p197_p12 }
  0x1f   :  { %p200_p1 = pnand %p199_p0, %p193_p11 }
  0x21   :  { %203 = shalt.err (!%p200_p1)
}
  0x22   :  { %s258_s1 = smov 128   ;;  %s259_s9 = smov 8  }
  0x23   :  { %22 = dma.hbm_to_vmem [thread:$0]  %s338_s0, 256, %s17_s27, [#allocation3], %s258_s1, %s258_s1, %s259_s9  }
  0x24   :  { %s260_s12 = smov [#allocation7]   ;;  %s204_s16 = scalar_lea.hbm %s340_s2, 16 }
  0x25   :  { %s41_s13 = sshll.u32 %s260_s12, 4  ;;  %p205_p2 = scmp.ne.s32.totalorder %s340_s2, %s204_s16  ;;  %s42_s13 = int_to_ptr.vmem [resolvable:$true] %s41_s13 }
  0x26   :  { %p208_p3 = scmp.lt.u32.totalorder %s204_s16, %s340_s2 }
  0x28   :  { %p210_p4 = pnand %p208_p3, %p205_p2 }
  0x2a   :  { %213 = shalt.err (!%p210_p4)
}
  0x2b   :  { %s214_s21 = scalar_lea.vmem %s42_s13, 16  ;;  %s218_s0 = scalar_lea.vmem %s42_s13, 32 }
  0x2c   :  { %p215_p5 = scmp.ne.s32.totalorder %s42_s13, %s214_s21  ;;  %p219_p6 = scmp.lt.s32.totalorder %s42_s13, %s42_s13 }
  0x2d   :  { %p220_p7 = scmp.lt.s32.totalorder %s218_s0, %s214_s21 }
  0x2f   :  { %p221_p8 = por %p220_p7, %p219_p6 }
  0x31   :  { %p222_p9 = pnand %p221_p8, %p215_p5 }
  0x33   :  { %225 = shalt.err (!%p222_p9)
}
  0x34   :  { %44 = dma.hbm_to_vmem [thread:$0]  %s340_s2, 16, %s42_s13, [#allocation6]  }
  0x35   :  { %248 = dma.done.wait [#allocation3], 256  }
  0x36   :  { %249 = vsyncadd [#allocation3], 4294967040 }
  0x37   :  { %250 = dma.done.wait [#allocation6], 144  }
  0x38   :  { %251 = vsyncadd [#allocation6], 4294967152  ;;  %v261_v0 = vmov 0.0   ;;  %vm262_vm0 = vmmov 0   ;;  %v159_v1 = vld [vmem:[#allocation5] sm:$0xff]   ;;  %v55_v2 = vld [vmem:[#allocation2] sm:$0xff] }
  0x39   :  { %143 = vmatprep.subr.bf16.mxu0 %v261_v0  ;;  %145 = vmatprep.mubr.msk.bf16.mxu0 %vm262_vm0, %v261_v0  ;;  %v56_v3 = vld [vmem:[#allocation2 + $0x8] sm:$0xff]  ;;  %vm73_vm1 = vcmask 130048   ;;  %v138_v5 = vld [vmem:[#allocation7] ss:$0 sm:$0xff]  ;;  %s263_s24 = smov [#allocation8]  }
  0x3a   :  { %144 = vmatpush3.bf16.msra.mxu0 %v159_v1  ;;  %v57_v4 = vpack.c.bf16 %v56_v3, %v55_v2  ;;  %s125_s25 = sshll.u32 %s263_s24, 4  ;;  %s126_s25 = int_to_ptr.vmem [resolvable:$true] %s125_s25 }
  0x3b   :  { %s226_s2 = scalar_lea.vmem %s126_s25, 256  ;;  %p231_p11 = scmp.lt.s32.totalorder %s126_s25, %s126_s25 }
  0x3c   :  { %p227_p10 = scmp.ne.s32.totalorder %s126_s25, %s226_s2  ;;  %p232_p12 = scmp.lt.s32.totalorder %s226_s2, %s226_s2 }
  0x3d   :  { %146 = vmatmul.mubr.msk.bf16.vlgmr.msra.gmra.mrb[0].mxu0 %vm73_vm1, %v57_v4 }
  0x3e   :  { %p233_p13 = por %p232_p12, %p231_p11 }
  0x40   :  { %p234_p0 = pnand %p233_p13, %p227_p10 }
 0x110   :  { %v111_v6 = vpop.f32.mrb[0].mxu0 }
 0x111   :  { %v112_v7 = vadd.f32 %v138_v5, %v111_v6  ;;  %v147_v8 = vpop.f32.mrb[1].mxu0 }
 0x112   :  { %v114_v9 = vpop.f32.mrb[2].mxu0 }
 0x113   :  { %118 = vst [vmem:[#allocation8] sm:$0xff] %v112_v7  ;;  %v115_v10 = vadd.f32 %v138_v5, %v114_v9  ;;  %v148_v11 = vpop.f32.mrb[3].mxu0 }
 0x115   :  { %119 = vst [vmem:[#allocation8 + $0x8] sm:$0xff] %v115_v10 }
 0x116   :  { %237 = shalt.err (!%p234_p0)
}
 0x117   :  { %s238_s28 = scalar_lea.hbm %s341_s3, 256 }
 0x118   :  { %p239_p1 = scmp.ne.s32.totalorder %s341_s3, %s238_s28  ;;  %p242_p2 = scmp.lt.u32.totalorder %s238_s28, %s341_s3 }
 0x11a   :  { %p244_p3 = pnand %p242_p2, %p239_p1 }
 0x11c   :  { %247 = shalt.err (!%p244_p3)
}
 0x11d   :  { %131 = dma.vmem_to_hbm [thread:$0]  %s126_s25, 256, %s341_s3, [#allocation4], %s258_s1, %s258_s1, %s259_s9  }
 0x11e   :  { %252 = dma.done.wait [#allocation4], 256  }
 0x11f   :  { %253 = vsyncadd [#allocation4], 4294967040 }
 0x120   :  { %135 = vsyncpa [#allocation3], 1 }
 0x121   :  { %136 = vsyncpa [#allocation6], 1 }
 0x122   :  { %137 = vsyncpa [#allocation4], 1 }

// kernel: tpu_custom_call.1
= control target key start
LH: loop header
LB: loop body
LE: loop exit
PB: predicated region body
PF: predicated region fallthrough
CT: control target
= control target key end

     0   :  { %8 = vsyncpa [#allocation3], 0  ;;  %s338_s0 = inlined_call_operand.hbm [shape: f32[16,16], index: 0, kind: input, shape index: {}]   ;;  %s339_s1 = inlined_call_operand.hbm [shape: bf16[16,128], index: 1, kind: input, shape index: {}]   ;;  %s340_s2 = inlined_call_operand.hbm [shape: f32[1,128], index: 2, kind: input, shape index: {}]   ;;  %s341_s3 = inlined_call_operand.hbm [shape: f32[16,128], index: 3, kind: output, shape index: {}]  }
   0x1   :  { %9 = vsyncpa [#allocation6], 0 }
   0x2   :  { %10 = vsyncpa [#allocation4], 0  ;;  %s254_s12 = smov [#allocation5]   ;;  %s160_s16 = scalar_lea.hbm %s339_s1, 128 }
   0x3   :  { %s28_s13 = sshll.u32 %s254_s12, 4  ;;  %p161_p0 = scmp.ne.s32.totalorder %s339_s1, %s160_s16  ;;  %s29_s13 = int_to_ptr.vmem [resolvable:$true] %s28_s13 }
   0x4   :  { %p164_p1 = scmp.lt.u32.totalorder %s160_s16, %s339_s1 }
   0x6   :  { %p166_p2 = pnand %p164_p1, %p161_p0 }
   0x8   :  { %169 = shalt.err (!%p166_p2)
}
   0x9   :  { %s170_s21 = scalar_lea.vmem %s29_s13, 128  ;;  %p175_p4 = scmp.lt.s32.totalorder %s29_s13, %s29_s13 }
   0xa   :  { %p171_p3 = scmp.ne.s32.totalorder %s29_s13, %s170_s21  ;;  %p176_p5 = scmp.lt.s32.totalorder %s170_s21, %s170_s21 }
   0xc   :  { %p177_p6 = por %p176_p5, %p175_p4 }
   0xe   :  { %p178_p7 = pnand %p177_p6, %p171_p3 }
  0x10   :  { %181 = shalt.err (!%p178_p7)
}
  0x11   :  { %s255_s22 = smov 64   ;;  %s256_s23 = smov 4  }
  0x12   :  { %34 = dma.hbm_to_vmem [thread:$0]  %s339_s1, 128, %s29_s13, [#allocation6], %s255_s22, %s255_s22, %s256_s23  }
  0x13   :  { %s257_s26 = smov [#allocation2]   ;;  %s182_s30 = scalar_lea.hbm %s338_s0, 256 }
  0x14   :  { %s16_s27 = sshll.u32 %s257_s26, 4  ;;  %p183_p8 = scmp.ne.s32.totalorder %s338_s0, %s182_s30  ;;  %s17_s27 = int_to_ptr.vmem [resolvable:$true] %s16_s27 }
  0x15   :  { %p186_p9 = scmp.lt.u32.totalorder %s182_s30, %s338_s0 }
  0x17   :  { %p188_p10 = pnand %p186_p9, %p183_p8 }
  0x19   :  { %191 = shalt.err (!%p188_p10)
}
  0x1a   :  { %s192_s8 = scalar_lea.vmem %s17_s27, 256  ;;  %p197_p12 = scmp.lt.s32.totalorder %s17_s27, %s17_s27 }
  0x1b   :  { %p193_p11 = scmp.ne.s32.totalorder %s17_s27, %s192_s8  ;;  %p198_p13 = scmp.lt.s32.totalorder %s192_s8, %s192_s8 }
  0x1d   :  { %p199_p0 = por %p198_p13, %p197_p12 }
  0x1f   :  { %p200_p1 = pnand %p199_p0, %p193_p11 }
  0x21   :  { %203 = shalt.err (!%p200_p1)
}
  0x22   :  { %s258_s1 = smov 128   ;;  %s259_s9 = smov 8  }
  0x23   :  { %22 = dma.hbm_to_vmem [thread:$0]  %s338_s0, 256, %s17_s27, [#allocation3], %s258_s1, %s258_s1, %s259_s9  }
  0x24   :  { %s260_s12 = smov [#allocation7]   ;;  %s204_s16 = scalar_lea.hbm %s340_s2, 16 }
  0x25   :  { %s41_s13 = sshll.u32 %s260_s12, 4  ;;  %p205_p2 = scmp.ne.s32.totalorder %s340_s2, %s204_s16  ;;  %s42_s13 = int_to_ptr.vmem [resolvable:$true] %s41_s13 }
  0x26   :  { %p208_p3 = scmp.lt.u32.totalorder %s204_s16, %s340_s2 }
  0x28   :  { %p210_p4 = pnand %p208_p3, %p205_p2 }
  0x2a   :  { %213 = shalt.err (!%p210_p4)
}
  0x2b   :  { %s214_s21 = scalar_lea.vmem %s42_s13, 16  ;;  %s218_s0 = scalar_lea.vmem %s42_s13, 32 }
  0x2c   :  { %p215_p5 = scmp.ne.s32.totalorder %s42_s13, %s214_s21  ;;  %p219_p6 = scmp.lt.s32.totalorder %s42_s13, %s42_s13 }
  0x2d   :  { %p220_p7 = scmp.lt.s32.totalorder %s218_s0, %s214_s21 }
  0x2f   :  { %p221_p8 = por %p220_p7, %p219_p6 }
  0x31   :  { %p222_p9 = pnand %p221_p8, %p215_p5 }
  0x33   :  { %225 = shalt.err (!%p222_p9)
}
  0x34   :  { %44 = dma.hbm_to_vmem [thread:$0]  %s340_s2, 16, %s42_s13, [#allocation6]  }
  0x35   :  { %248 = dma.done.wait [#allocation3], 256  }
  0x36   :  { %249 = vsyncadd [#allocation3], 4294967040 }
  0x37   :  { %250 = dma.done.wait [#allocation6], 144  }
  0x38   :  { %251 = vsyncadd [#allocation6], 4294967152  ;;  %v261_v0 = vmov 0.0   ;;  %vm262_vm0 = vmmov 0   ;;  %v159_v1 = vld [vmem:[#allocation5] sm:$0xff]   ;;  %v55_v2 = vld [vmem:[#allocation2] sm:$0xff] }
  0x39   :  { %143 = vmatprep.subr.bf16.mxu0 %v261_v0  ;;  %145 = vmatprep.mubr.msk.bf16.mxu0 %vm262_vm0, %v261_v0  ;;  %v56_v3 = vld [vmem:[#allocation2 + $0x8] sm:$0xff]  ;;  %vm73_vm1 = vcmask 130048   ;;  %v138_v5 = vld [vmem:[#allocation7] ss:$0 sm:$0xff]  ;;  %s263_s24 = smov [#allocation8]  }
  0x3a   :  { %144 = vmatpush3.bf16.msra.mxu0 %v159_v1  ;;  %v57_v4 = vpack.c.bf16 %v56_v3, %v55_v2  ;;  %s125_s25 = sshll.u32 %s263_s24, 4  ;;  %s126_s25 = int_to_ptr.vmem [resolvable:$true] %s125_s25 }
  0x3b   :  { %s226_s2 = scalar_lea.vmem %s126_s25, 256  ;;  %p231_p11 = scmp.lt.s32.totalorder %s126_s25, %s126_s25 }
  0x3c   :  { %p227_p10 = scmp.ne.s32.totalorder %s126_s25, %s226_s2  ;;  %p232_p12 = scmp.lt.s32.totalorder %s226_s2, %s226_s2 }
  0x3d   :  { %146 = vmatmul.mubr.msk.bf16.vlgmr.msra.gmra.mrb[0].mxu0 %vm73_vm1, %v57_v4 }
  0x3e   :  { %p233_p13 = por %p232_p12, %p231_p11 }
  0x40   :  { %p234_p0 = pnand %p233_p13, %p227_p10 }
 0x110   :  { %v111_v6 = vpop.f32.mrb[0].mxu0 }
 0x111   :  { %v112_v7 = vadd.f32 %v138_v5, %v111_v6  ;;  %v147_v8 = vpop.f32.mrb[1].mxu0 }
 0x112   :  { %v114_v9 = vpop.f32.mrb[2].mxu0 }
 0x113   :  { %118 = vst [vmem:[#allocation8] sm:$0xff] %v112_v7  ;;  %v115_v10 = vadd.f32 %v138_v5, %v114_v9  ;;  %v148_v11 = vpop.f32.mrb[3].mxu0 }
 0x115   :  { %119 = vst [vmem:[#allocation8 + $0x8] sm:$0xff] %v115_v10 }
 0x116   :  { %237 = shalt.err (!%p234_p0)
}
 0x117   :  { %s238_s28 = scalar_lea.hbm %s341_s3, 256 }
 0x118   :  { %p239_p1 = scmp.ne.s32.totalorder %s341_s3, %s238_s28  ;;  %p242_p2 = scmp.lt.u32.totalorder %s238_s28, %s341_s3 }
 0x11a   :  { %p244_p3 = pnand %p242_p2, %p239_p1 }
 0x11c   :  { %247 = shalt.err (!%p244_p3)
}
 0x11d   :  { %131 = dma.vmem_to_hbm [thread:$0]  %s126_s25, 256, %s341_s3, [#allocation4], %s258_s1, %s258_s1, %s259_s9  }
 0x11e   :  { %252 = dma.done.wait [#allocation4], 256  }
 0x11f   :  { %253 = vsyncadd [#allocation4], 4294967040 }
 0x120   :  { %135 = vsyncpa [#allocation3], 1 }
 0x121   :  { %136 = vsyncpa [#allocation6], 1 }
 0x122   :  { %137 = vsyncpa [#allocation4], 1 }

</bundles_post_ra>
